<compile_context>
chip_gen: v5e
topology: v5e:2x2
jax: 0.10.0
libtpu: 0.0.40
codegen_flags: <defaults>
</compile_context>

<pallas_src>
import jax
import jax.numpy as jnp
from jax.experimental import pallas as pl
from jax.experimental.pallas import tpu as pltpu


def actor_kernel(x_ref, w1_ref, b1_ref, w2_ref, b2_ref, w3_ref, b3_ref, o_ref):
    # One batch tile per grid step; weights/biases are whole-array resident
    # blocks (constant index map -> DMA'd once).  All math is f32.
    x = x_ref[...]

    h1 = jnp.tanh(jnp.dot(x, w1_ref[...],
                          preferred_element_type=jnp.float32) + b1_ref[...])
    h2 = jnp.tanh(jnp.dot(h1, w2_ref[...],
                          preferred_element_type=jnp.float32) + b2_ref[...])
    logits = jnp.dot(h2, w3_ref[...],
                     preferred_element_type=jnp.float32) + b3_ref[...]

    # Numerically-stable softmax over the (lane-dense, 128-wide) last axis.
    # Padded action columns carry a -1e30 bias -> exp underflows to exactly 0,
    # so they contribute nothing to max/sum.  Exact divide (no approx recip):
    # rows must sum to 1 to f32 precision for downstream sampling/entropy math.
    m = jnp.max(logits, axis=-1, keepdims=True)
    e = jnp.exp(logits - m)
    denom = jnp.sum(e, axis=-1, keepdims=True)
    o_ref[...] = (e / denom).astype(o_ref.dtype)


def _round_up(x, m):
    return ((x + m - 1) // m) * m


def actor_forward(x, params, *, tile_b=2048, out_dtype=jnp.float32,
                  dimension_semantics=("parallel",)):
    """Fused Actor forward.

    tile_b: max batch rows per grid step.  2048 (default) fits every
      generation's scoped-VMEM default (~7 MiB double-buffered footprint);
      4096 also fits v6e/v7x defaults, on v5e pass
      pltpu.CompilerParams(vmem_limit_bytes=...) before going that large.
    out_dtype: jnp.bfloat16 halves the dominant (output-store) HBM traffic;
      default f32 preserves exact parity with the PyTorch module.
    dimension_semantics: on v7x use (pltpu.CORE_PARALLEL,) with >=2 grid steps
      to split the batch grid across its 2 TensorCores.
    """
    w1, b1, w2, b2, w3, b3 = params
    batch, state_dim = x.shape
    n_actions = w3.shape[1]

    # --- Lane-dense output: pad the final layer's output dim to a multiple of
    # 128 (zero weights, -1e30 bias -> exactly-zero softmax mass), so stores
    # are full (8,128)-tile writes rather than masked vst.msk on a few lanes.
    n_pad = max(128, _round_up(n_actions, 128))
    if n_pad != n_actions:
        w3p = jnp.zeros((w3.shape[0], n_pad), w3.dtype).at[:, :n_actions].set(w3)
        b3p = jnp.full((1, n_pad), -1e30, b3.dtype).at[:, :n_actions].set(b3)
    else:
        w3p, b3p = w3, b3

    # --- Balanced batch tiling, no host-side jnp.pad of x (that pad was an
    # extra full HBM pass).  Rows are independent, so the ragged last input
    # block (OOB rows read as padding) only affects output rows we discard.
    if batch <= tile_b:
        tile_b = batch                       # single block == full array dims
        num_tiles = 1
    else:
        num_tiles = pl.cdiv(batch, tile_b)
        tile_b = _round_up(pl.cdiv(batch, num_tiles), 8)   # balanced, /8-aligned
        num_tiles = pl.cdiv(batch, tile_b)
    b_out = num_tiles * tile_b               # <8 rows of waste per tile

    out = pl.pallas_call(
        actor_kernel,
        out_shape=jax.ShapeDtypeStruct((b_out, n_pad), out_dtype),
        grid=(num_tiles,),
        in_specs=[
            pl.BlockSpec((tile_b, state_dim), lambda i: (i, 0)),  # x: row-tiled
            pl.BlockSpec(w1.shape, lambda i: (0, 0)),   # weights/biases:
            pl.BlockSpec(b1.shape, lambda i: (0, 0)),   # constant index map ->
            pl.BlockSpec(w2.shape, lambda i: (0, 0)),   # DMA'd once, stay
            pl.BlockSpec(b2.shape, lambda i: (0, 0)),   # VMEM-resident
            pl.BlockSpec(w3p.shape, lambda i: (0, 0)),
            pl.BlockSpec(b3p.shape, lambda i: (0, 0)),
        ],
        out_specs=pl.BlockSpec((tile_b, n_pad), lambda i: (i, 0)),
        compiler_params=pltpu.CompilerParams(
            dimension_semantics=tuple(dimension_semantics)),
    )(x, w1, b1, w2, b2, w3p, b3p)

    # Module contract is (batch, n_actions) probabilities.  Downstream code
    # that can consume the padded (b_out, 128) layout (or only needs an
    # argmax/sampled action) should do so under the same jit to avoid this
    # extra strided HBM pass over the output.
    return out[:batch, :n_actions]


def init_params(key, state_dim, n_actions):
    """Deterministic synthetic parameters (shapes follow the PyTorch module)."""
    ks = jax.random.split(key, 6)
    # Stored as [in, out]; biases kept 2-D ([1, out]) for clean TPU layout.
    w1 = jax.random.normal(ks[0], (state_dim, 64), jnp.float32) * 0.1
    b1 = jax.random.normal(ks[1], (1, 64), jnp.float32) * 0.1
    w2 = jax.random.normal(ks[2], (64, 32), jnp.float32) * 0.1
    b2 = jax.random.normal(ks[3], (1, 32), jnp.float32) * 0.1
    w3 = jax.random.normal(ks[4], (32, n_actions), jnp.float32) * 0.1
    b3 = jax.random.normal(ks[5], (1, n_actions), jnp.float32) * 0.1
    return (w1, b1, w2, b2, w3, b3)


def actor_ref(x, params):
    """Pure-JAX reference for correctness checking."""
    w1, b1, w2, b2, w3, b3 = params
    h1 = jnp.tanh(x @ w1 + b1)
    h2 = jnp.tanh(h1 @ w2 + b2)
    logits = h2 @ w3 + b3
    return jax.nn.softmax(logits, axis=-1)


if __name__ == "__main__":
    key = jax.random.PRNGKey(0)
    k_x, k_p, k_x2 = jax.random.split(key, 3)

    # Small shapes consistent with the module: a flattened room-grid state
    # (e.g. 9x9 layout -> state_dim=36 after flattening channels) and 4 actions.
    batch, state_dim, n_actions = 8, 36, 4

    x = jax.random.normal(k_x, (batch, state_dim), jnp.float32)
    params = init_params(k_p, state_dim, n_actions)
    ref = actor_ref(x, params)

    # 1) f32 output, single-tile grid (default path, exact parity).
    out = jax.block_until_ready(actor_forward(x, params))
    assert out.shape == (batch, n_actions)
    assert jnp.allclose(out, ref, atol=1e-3, rtol=1e-3), "f32 path mismatch vs reference"
    assert jnp.allclose(jnp.sum(out, axis=-1), 1.0, atol=1e-5), "softmax rows must sum to 1"

    # 2) bf16 output (halves the dominant output-store HBM traffic).
    out_bf16 = jax.block_until_ready(
        actor_forward(x, params, out_dtype=jnp.bfloat16))
    assert out_bf16.shape == (batch, n_actions)
    assert out_bf16.dtype == jnp.bfloat16
    assert jnp.allclose(out_bf16.astype(jnp.float32), ref, atol=2e-2, rtol=2e-2), \
        "bf16-output path mismatch vs reference"

    # 3) Multi-tile grid with a ragged batch: balanced 48-row tiles, partial
    #    last input block, no host-side padding pass.
    batch2 = 130
    x2 = jax.random.normal(k_x2, (batch2, state_dim), jnp.float32)
    out2 = jax.block_until_ready(actor_forward(x2, params, tile_b=64))
    ref2 = actor_ref(x2, params)
    assert out2.shape == (batch2, n_actions)
    assert jnp.allclose(out2, ref2, atol=1e-3, rtol=1e-3), "multi-tile path mismatch"
    assert jnp.allclose(jnp.sum(out2, axis=-1), 1.0, atol=1e-5)

    print("KERNEL_OK")
</pallas_src>

<mosaic_0001>
module attributes {stable_mosaic.version = 11 : i64} {
  func.func @actor_kernel(%arg0: i32, %arg1: memref<8x36xf32, #tpu.memory_space<vmem>>, %arg2: memref<36x64xf32, #tpu.memory_space<vmem>>, %arg3: memref<1x64xf32, #tpu.memory_space<vmem>>, %arg4: memref<64x32xf32, #tpu.memory_space<vmem>>, %arg5: memref<1x32xf32, #tpu.memory_space<vmem>>, %arg6: memref<32x128xf32, #tpu.memory_space<vmem>>, %arg7: memref<1x128xf32, #tpu.memory_space<vmem>>, %arg8: memref<8x128xf32, #tpu.memory_space<vmem>>) attributes {dimension_semantics = [#tpu.dimension_semantics<parallel>], iteration_bounds = array<i64: 1>, scalar_prefetch = 0 : i64, scratch_operands = 0 : i64, tpu.core_type = #tpu.core_type<tc>, window_params = [{transform_indices = @transform_0, window_bounds = array<i64: 8, 36>}, {pipeline_mode = #tpu.pipeline_mode<synchronous>, transform_indices = @transform_1, window_bounds = array<i64: 36, 64>}, {pipeline_mode = #tpu.pipeline_mode<synchronous>, transform_indices = @transform_2, window_bounds = array<i64: 1, 64>}, {pipeline_mode = #tpu.pipeline_mode<synchronous>, transform_indices = @transform_3, window_bounds = array<i64: 64, 32>}, {pipeline_mode = #tpu.pipeline_mode<synchronous>, transform_indices = @transform_4, window_bounds = array<i64: 1, 32>}, {pipeline_mode = #tpu.pipeline_mode<synchronous>, transform_indices = @transform_5, window_bounds = array<i64: 32, 128>}, {pipeline_mode = #tpu.pipeline_mode<synchronous>, transform_indices = @transform_6, window_bounds = array<i64: 1, 128>}, {transform_indices = @transform_7, window_bounds = array<i64: 8, 128>}]} {
    %c0 = arith.constant 0 : index
    %c0_0 = arith.constant 0 : index
    %0 = vector.load %arg1[%c0, %c0_0] : memref<8x36xf32, #tpu.memory_space<vmem>>, vector<8x36xf32>
    %c0_1 = arith.constant 0 : index
    %c0_2 = arith.constant 0 : index
    %1 = vector.load %arg2[%c0_1, %c0_2] : memref<36x64xf32, #tpu.memory_space<vmem>>, vector<36x64xf32>
    %cst = arith.constant dense<0.000000e+00> : vector<8x64xf32>
    %2 = tpu.matmul %0, %1, %cst {dimension_numbers = #tpu.dot_dimension_numbers<[1], [0], [0], [1], [0, 0, 1, 1], [], []>} : vector<8x36xf32>, vector<36x64xf32>, vector<8x64xf32> -> vector<8x64xf32>
    %c0_3 = arith.constant 0 : index
    %c0_4 = arith.constant 0 : index
    %3 = vector.load %arg3[%c0_3, %c0_4] : memref<1x64xf32, #tpu.memory_space<vmem>>, vector<1x64xf32>
    %4 = vector.broadcast %3 : vector<1x64xf32> to vector<8x64xf32>
    %5 = arith.addf %2, %4 : vector<8x64xf32>
    %6 = math.tanh %5 : vector<8x64xf32>
    %c0_5 = arith.constant 0 : index
    %c0_6 = arith.constant 0 : index
    %7 = vector.load %arg4[%c0_5, %c0_6] : memref<64x32xf32, #tpu.memory_space<vmem>>, vector<64x32xf32>
    %cst_7 = arith.constant dense<0.000000e+00> : vector<8x32xf32>
    %8 = tpu.matmul %6, %7, %cst_7 {dimension_numbers = #tpu.dot_dimension_numbers<[1], [0], [0], [1], [0, 0, 1, 1], [], []>} : vector<8x64xf32>, vector<64x32xf32>, vector<8x32xf32> -> vector<8x32xf32>
    %c0_8 = arith.constant 0 : index
    %c0_9 = arith.constant 0 : index
    %9 = vector.load %arg5[%c0_8, %c0_9] : memref<1x32xf32, #tpu.memory_space<vmem>>, vector<1x32xf32>
    %10 = vector.broadcast %9 : vector<1x32xf32> to vector<8x32xf32>
    %11 = arith.addf %8, %10 : vector<8x32xf32>
    %12 = math.tanh %11 : vector<8x32xf32>
    %c0_10 = arith.constant 0 : index
    %c0_11 = arith.constant 0 : index
    %13 = vector.load %arg6[%c0_10, %c0_11] : memref<32x128xf32, #tpu.memory_space<vmem>>, vector<32x128xf32>
    %cst_12 = arith.constant dense<0.000000e+00> : vector<8x128xf32>
    %14 = tpu.matmul %12, %13, %cst_12 {dimension_numbers = #tpu.dot_dimension_numbers<[1], [0], [0], [1], [0, 0, 1, 1], [], []>} : vector<8x32xf32>, vector<32x128xf32>, vector<8x128xf32> -> vector<8x128xf32>
    %c0_13 = arith.constant 0 : index
    %c0_14 = arith.constant 0 : index
    %15 = vector.load %arg7[%c0_13, %c0_14] : memref<1x128xf32, #tpu.memory_space<vmem>>, vector<1x128xf32>
    %16 = vector.broadcast %15 : vector<1x128xf32> to vector<8x128xf32>
    %17 = arith.addf %14, %16 : vector<8x128xf32>
    %cst_15 = arith.constant dense<0xFF800000> : vector<8xf32>
    %18 = vector.multi_reduction <maximumf>, %17, %cst_15 [1] : vector<8x128xf32> to vector<8xf32>
    %19 = vector.shape_cast %18 : vector<8xf32> to vector<8x1xf32>
    %20 = vector.broadcast %19 : vector<8x1xf32> to vector<8x128xf32>
    %21 = arith.subf %17, %20 : vector<8x128xf32>
    %22 = math.exp %21 : vector<8x128xf32>
    %cst_16 = arith.constant dense<0.000000e+00> : vector<8xf32>
    %23 = vector.multi_reduction <add>, %22, %cst_16 [1] : vector<8x128xf32> to vector<8xf32>
    %24 = vector.shape_cast %23 : vector<8xf32> to vector<8x1xf32>
    %25 = vector.broadcast %24 : vector<8x1xf32> to vector<8x128xf32>
    %26 = arith.divf %22, %25 : vector<8x128xf32>
    %c0_17 = arith.constant 0 : index
    %c0_18 = arith.constant 0 : index
    %27 = vector.load %arg8[%c0_17, %c0_18] : memref<8x128xf32, #tpu.memory_space<vmem>>, vector<8x128xf32>
    tpu.vector_store %arg8[%c0_17, %c0_18], %26 {strides = array<i32>} : memref<8x128xf32, #tpu.memory_space<vmem>>, vector<8x128xf32>,
    return
  }
  func.func @transform_0(%arg0: i32) -> (i32, i32) {
    %c0_i32 = arith.constant 0 : i32
    %c0_i32_0 = arith.constant 0 : i32
    return %arg0, %c0_i32 : i32, i32
  }
  func.func @transform_1(%arg0: i32) -> (i32, i32) {
    %c0_i32 = arith.constant 0 : i32
    %c0_i32_0 = arith.constant 0 : i32
    %c0_i32_1 = arith.constant 0 : i32
    return %c0_i32, %c0_i32_0 : i32, i32
  }
  func.func @transform_2(%arg0: i32) -> (i32, i32) {
    %c0_i32 = arith.constant 0 : i32
    %c0_i32_0 = arith.constant 0 : i32
    %c0_i32_1 = arith.constant 0 : i32
    return %c0_i32, %c0_i32_0 : i32, i32
  }
  func.func @transform_3(%arg0: i32) -> (i32, i32) {
    %c0_i32 = arith.constant 0 : i32
    %c0_i32_0 = arith.constant 0 : i32
    %c0_i32_1 = arith.constant 0 : i32
    return %c0_i32, %c0_i32_0 : i32, i32
  }
  func.func @transform_4(%arg0: i32) -> (i32, i32) {
    %c0_i32 = arith.constant 0 : i32
    %c0_i32_0 = arith.constant 0 : i32
    %c0_i32_1 = arith.constant 0 : i32
    return %c0_i32, %c0_i32_0 : i32, i32
  }
  func.func @transform_5(%arg0: i32) -> (i32, i32) {
    %c0_i32 = arith.constant 0 : i32
    %c0_i32_0 = arith.constant 0 : i32
    %c0_i32_1 = arith.constant 0 : i32
    return %c0_i32, %c0_i32_0 : i32, i32
  }
  func.func @transform_6(%arg0: i32) -> (i32, i32) {
    %c0_i32 = arith.constant 0 : i32
    %c0_i32_0 = arith.constant 0 : i32
    %c0_i32_1 = arith.constant 0 : i32
    return %c0_i32, %c0_i32_0 : i32, i32
  }
  func.func @transform_7(%arg0: i32) -> (i32, i32) {
    %c0_i32 = arith.constant 0 : i32
    %c0_i32_0 = arith.constant 0 : i32
    return %arg0, %c0_i32 : i32, i32
  }
}

</mosaic_0001>

<bundles_post_ra>
// kernel: tpu_custom_call.1
= control target key start
LH: loop header
LB: loop body
LE: loop exit
PB: predicated region body
PF: predicated region fallthrough
CT: control target
= control target key end

     0   :  { %vm41_vm0 = vcmask 1043456   ;;  %s323_s0 = inlined_call_operand.vmem [shape: f32[8,36], index: 0, kind: input, shape index: {}]   ;;  %s324_s1 = inlined_call_operand.vmem [shape: f32[36,64], index: 1, kind: input, shape index: {}]   ;;  %s325_s2 = inlined_call_operand.vmem [shape: f32[1,64], index: 2, kind: input, shape index: {}]   ;;  %s326_s3 = inlined_call_operand.vmem [shape: f32[64,32], index: 3, kind: input, shape index: {}]   ;;  %s327_s4 = inlined_call_operand.vmem [shape: f32[1,32], index: 4, kind: input, shape index: {}]   ;;  %s328_s5 = inlined_call_operand.vmem [shape: f32[32,128], index: 5, kind: input, shape index: {}]   ;;  %s329_s6 = inlined_call_operand.vmem [shape: f32[1,128], index: 6, kind: input, shape index: {}]   ;;  %s330_s7 = inlined_call_operand.hbm [shape: f32[8,128], index: 7, kind: output, shape index: {}]  }
   0x1   :  { %v32_v0 = vld [vmem:[%s324_s1 + $0x20] sm:$0xf]  ;;  %v31_v1 = vld [vmem:[%s324_s1 + $0x18] sm:$0xff]  ;;  %v30_v2 = vld [vmem:[%s324_s1 + $0x10] sm:$0xff] }
   0x2   :  { %174 = vmatpush.msk.msra.mxu0 %vm41_vm0, %v32_v0  ;;  %v73_v3 = vld [vmem:[%s326_s3 + $0x38] sm:$0xff]  ;;  %v72_v4 = vld [vmem:[%s326_s3 + $0x30] sm:$0xff]  ;;  %v29_v5 = vld [vmem:[%s324_s1 + $0x8] sm:$0xff] }
   0x3   :  { %90 = vmatpush.msra.mxu1 %v73_v3  ;;  %v71_v6 = vld [vmem:[%s326_s3 + $0x28] sm:$0xff] }
   0x4   :  { %57 = vmatpush.msra.mxu0 %v31_v1 }
   0x5   :  { %12 = vsyncpa [#allocation3], 0  ;;  %91 = vmatpush.msra.mxu1 %v72_v4  ;;  %v28_v7 = vld [vmem:[%s324_s1] sm:$0xff]  ;;  %vm37_vm1 = vcmask 293888   ;;  %v69_v10 = vld [vmem:[%s326_s3 + $0x18] sm:$0xff]  ;;  %vm78_vm2 = vcmask 523264  }
   0x6   :  { %58 = vmatpush.msra.mxu0 %v30_v2  ;;  %v27_v8 = vld [vmem:[%s323_s0] sm:$0xff]  ;;  %v68_v11 = vld [vmem:[%s326_s3 + $0x10] sm:$0xff]  ;;  %v67_v12 = vld [vmem:[%s326_s3 + $0x8] sm:$0xff]  ;;  %vm111_vm3 = vcmask 261120   ;;  %s165_s17 = sshll.u32 %s330_s7, 4  ;;  %s166_s17 = int_to_ptr.hbm [resolvable:$true] %s165_s17 }
   0x7   :  { %92 = vmatpush.msra.mxu1 %v71_v6  ;;  %v70_v9 = vld [vmem:[%s326_s3 + $0x20] sm:$0xff]  ;;  %v106_v18 = vld [vmem:[%s328_s5 + $0x18] sm:$0xff]  ;;  %v105_v19 = vld [vmem:[%s328_s5 + $0x10] sm:$0xff] }
   0x8   :  { %59 = vmatpush.msra.mxu0 %v29_v5  ;;  %v66_v13 = vld [vmem:[%s326_s3] sm:$0xff]  ;;  %127 = vmatpush.msra.mxu2 %v106_v18  ;;  %v104_v20 = vld [vmem:[%s328_s5 + $0x8] sm:$0xff] }
   0x9   :  { %93 = vmatpush.msra.mxu1 %v70_v9  ;;  %v179_v14 = vld [vmem:[%s325_s2] ss:$0 sm:$0xff] }
   0xa   :  { %60 = vmatpush.msra.mxu0 %v28_v7  ;;  %128 = vmatpush.msra.mxu2 %v105_v19  ;;  %v103_v21 = vld [vmem:[%s328_s5] sm:$0xff] }
   0xb   :  { %175 = vmatmul.msk.f32.vlgmr.msra.gmra.mxu0 %vm37_vm1, %v27_v8  ;;  %94 = vmatpush.msra.mxu1 %v69_v10  ;;  %v180_v22 = vld [vmem:[%s327_s4] ss:$0 sm:$0xff]  ;;  %s216_s4 = smov [#allocation2]  }
   0xc   :  { %129 = vmatpush.msra.mxu2 %v104_v20  ;;  %v181_v26 = vld [vmem:[%s329_s6] ss:$0 sm:$0xff]  ;;  %s163_s5 = sshll.u32 %s216_s4, 4  ;;  %s164_s5 = int_to_ptr.vmem [resolvable:$true] %s163_s5 }
   0xd   :  { %95 = vmatpush.msra.mxu1 %v68_v11 }
   0xe   :  { %130 = vmatpush.msra.mxu2 %v103_v21 }
   0xf   :  { %96 = vmatpush.msra.mxu1 %v67_v12 }
  0x11   :  { %97 = vmatpush.msra.mxu1 %v66_v13 }
  0x88   :  { %v62_v15 = vpop.f32.mrf.mxu0 }
  0x89   :  { %v63_v16 = vadd.f32 %v179_v14, %v62_v15 }
  0x8b   :  { %182 = vtanh.f32 %v63_v16 }
  0x91   :  { %v183_v17 = vpop.eup %182 }
  0x92   :  { %176 = vmatmul.msk.f32.vlgmr.msra.gmra.mxu1 %vm78_vm2, %v183_v17 }
 0x10f   :  { %v99_v23 = vpop.f32.mrf.mxu1 }
 0x110   :  { %v100_v24 = vadd.f32 %v180_v22, %v99_v23 }
 0x112   :  { %184 = vtanh.f32 %v100_v24 }
 0x118   :  { %v185_v25 = vpop.eup %184 }
 0x119   :  { %177 = vmatmul.msk.f32.vlgmr.msra.gmra.mxu2 %vm111_vm3, %v185_v25 }
 0x19c   :  { %v132_v27 = vpop.f32.mrf.mxu2 }
 0x19d   :  { %v133_v28 = vadd.f32 %v181_v26, %v132_v27 }
 0x19f   :  { %135 = vmax.xlane.f32.xlu0 %v133_v28 }
 0x212   :  { %v136_v29 = vpop.xlane.xlu0 %135 }
 0x213   :  { %v137_v30 = vsub.f32 %v133_v28, %v136_v29 }
 0x215   :  { %v138_v31 = vmul.f32 1.442695, %v137_v30 }
 0x217   :  { %186 = vpow2.f32 %v138_v31 }
 0x21d   :  { %v187_v32 = vpop.eup %186 }
 0x21e   :  { %140 = vadd.xlane.f32.xlu0 %v187_v32 }
 0x291   :  { %v141_v33 = vpop.xlane.xlu0 %140 }
 0x292   :  { %188 = vrcp.f32 %v141_v33  ;;  %v153_v37 = vand.u32 2147483648, %v141_v33  ;;  %v151_v39 = vand.u32 2147483647, %v141_v33  ;;  %vm147_vm5 = vweird.f32 %v141_v33 }
 0x294   :  { %v154_v41 = vor.u32 1.1754944e-38, %v153_v37  ;;  %vm152_vm7 = vcmp.eq.f32.partialorder %v151_v39, 8.507059e+37 }
 0x298   :  { %v189_v34 = vpop.eup %188 }
 0x299   :  { %v143_v35 = vmul.f32 %v189_v34, %v141_v33  ;;  %vm148_vm4 = vweird.f32 %v189_v34 }
 0x29a   :  { %vm149_vm6 = vmor %vm147_vm5, %vm148_vm4 }
 0x29b   :  { %v144_v36 = vsub.f32 1.0, %v143_v35 }
 0x29d   :  { %v145_v38 = vmul.f32 %v189_v34, %v144_v36 }
 0x29f   :  { %v146_v40 = vadd.f32 %v189_v34, %v145_v38 }
 0x2a1   :  { %v150_v42 = vsel %vm149_vm6, %v189_v34, %v146_v40 }
 0x2a2   :  { %v155_v43 = vsel %vm152_vm7, %v154_v41, %v150_v42 }
 0x2a3   :  { %v156_v44 = vmul.f32 %v187_v32, %v155_v43 }
 0x2a5   :  { %157 = vst [vmem:[#allocation2] sm:$0xff] %v156_v44 }
 0x2a6   :  { %168 = dma.vmem_to_hbm [thread:$0]  %s164_s5, 128, %s166_s17, [#allocation3]  }
 0x2a7   :  { %214 = dma.done.wait [#allocation3], 128  }
 0x2a8   :  { %215 = vsyncadd [#allocation3], 4294967168 }
 0x2a9   :  { %173 = vsyncpa [#allocation3], 1 }

</bundles_post_ra>
